<compile_context>
chip_gen: v7x
topology: tpu7x:2x2x1
jax: 0.10.0
libtpu: 0.0.40
codegen_flags: <defaults>
</compile_context>

<pallas_src>
import jax
import jax.numpy as jnp
from jax.experimental import pallas as pl
from jax.experimental.pallas import tpu as pltpu


LANE = 128  # lane width of a TPU vreg


# ----------------------------------------------------------------------------
# Kernel
# ----------------------------------------------------------------------------
def gcn_fused_kernel(a_ref, x_ref, w1_ref, b1_ref, w2_ref, b2_ref,
                     s_src_ref, s_dst_ref, o_ref):
    """Fused 2-layer GCN encoder + in-kernel edge gather + dot-product decode."""
    a = a_ref[...]                                          # (N, N)  bf16

    # ---- layer 1: h = relu(A @ (X W1) + b1) --------------------------------
    xw = jnp.dot(x_ref[...], w1_ref[...],                   # bf16 x bf16 -> f32
                 preferred_element_type=jnp.float32)        # (N, Hp)
    h = jnp.dot(a, xw.astype(jnp.bfloat16),
                preferred_element_type=jnp.float32)
    h = jnp.maximum(h + b1_ref[...], 0.0)                   # (N, Hp) f32

    # ---- layer 2: z = A @ (h W2) + b2 --------------------------------------
    hw = jnp.dot(h.astype(jnp.bfloat16), w2_ref[...],
                 preferred_element_type=jnp.float32)
    z = jnp.dot(a, hw.astype(jnp.bfloat16),
                preferred_element_type=jnp.float32) + b2_ref[...]   # (N, Hp) f32

    # ---- fused decode --------------------------------------------------------
    # Edge-endpoint gather as exact one-hot selection matmuls (f32 selectors,
    # f32 z -> exact row selection), then a lane-axis multiply-reduce.
    z_src = jnp.dot(s_src_ref[...], z, preferred_element_type=jnp.float32)  # (E, Hp)
    z_dst = jnp.dot(s_dst_ref[...], z, preferred_element_type=jnp.float32)  # (E, Hp)
    scores = jnp.sum(z_src * z_dst, axis=1)                                 # (E,)
    o_ref[...] = scores[None, :].astype(o_ref.dtype)        # (1, E) lane-dense


# ----------------------------------------------------------------------------
# Wrappers
# ----------------------------------------------------------------------------
def _vmem_spec():
    return pl.BlockSpec(memory_space=pltpu.MemorySpace.VMEM)


def build_normalized_adjacency(edge_index, num_nodes):
    """Dense D^{-1/2}(A + I)D^{-1/2} matching PyG gcn_norm (source -> target)."""
    src, dst = edge_index[0], edge_index[1]
    a = jnp.zeros((num_nodes, num_nodes), jnp.float32)
    a = a.at[dst, src].add(1.0)                # row = destination, col = source
    a = a + jnp.eye(num_nodes, dtype=jnp.float32)
    deg = a.sum(axis=1)
    dinv = jnp.where(deg > 0, 1.0 / jnp.sqrt(deg), 0.0)
    return dinv[:, None] * a * dinv[None, :]


def gcn_link_predictor_forward(params, x, edge_index):
    n, _ = x.shape
    hidden = params["w2"].shape[1]
    num_edges = edge_index.shape[1]
    # pad hidden channels up to a full lane width (exact: pads stay zero)
    hp = max(LANE, ((hidden + LANE - 1) // LANE) * LANE)

    # ---- glue (plain JAX): dense normalized adjacency + one-hot selectors ---
    a_norm = build_normalized_adjacency(edge_index, n).astype(jnp.bfloat16)
    s_src = jax.nn.one_hot(edge_index[0], n, dtype=jnp.float32)   # (E, N)
    s_dst = jax.nn.one_hot(edge_index[1], n, dtype=jnp.float32)   # (E, N)

    # lane-pad parameters; bf16 MXU operands (f32 accumulation in-kernel)
    w1p = jnp.pad(params["w1"], ((0, 0), (0, hp - hidden))).astype(jnp.bfloat16)
    b1p = jnp.pad(params["b1"], ((0, 0), (0, hp - hidden)))
    w2p = jnp.pad(params["w2"],
                  ((0, hp - hidden), (0, hp - hidden))).astype(jnp.bfloat16)
    b2p = jnp.pad(params["b2"], ((0, 0), (0, hp - hidden)))

    # TODO(synk): for large N the dense (N, N) adjacency no longer fits a
    # single whole-array VMEM block (especially v7x's 64 MiB VMEM); split into
    # two row-tiled pallas_calls with a K-reduction grid axis ("arbitrary"),
    # f32 VMEM accumulators finalized under pl.when, and the row-tile axis
    # marked "parallel" so v7x's two TensorCores share it.
    scores = pl.pallas_call(
        gcn_fused_kernel,
        out_shape=jax.ShapeDtypeStruct((1, num_edges), jnp.float32),
        in_specs=[_vmem_spec()] * 8,
        out_specs=_vmem_spec(),
    )(a_norm, x.astype(jnp.bfloat16), w1p, b1p, w2p, b2p, s_src, s_dst)
    return scores[0]


def reference_forward(params, x, edge_index):
    a_norm = build_normalized_adjacency(edge_index, x.shape[0])
    h = a_norm @ (x @ params["w1"]) + params["b1"]
    h = jnp.maximum(h, 0.0)
    z = a_norm @ (h @ params["w2"]) + params["b2"]
    return (z[edge_index[0]] * z[edge_index[1]]).sum(axis=1)


# ----------------------------------------------------------------------------
# Main
# ----------------------------------------------------------------------------
if __name__ == "__main__":
    key = jax.random.PRNGKey(0)
    num_nodes = 64
    in_channels = 16
    hidden_channels = 32
    num_edges = 128

    k_x, k_e0, k_e1, k_w1, k_w2 = jax.random.split(key, 5)

    x = jax.random.normal(k_x, (num_nodes, in_channels), jnp.float32)
    edge_index = jnp.stack([
        jax.random.randint(k_e0, (num_edges,), 0, num_nodes),
        jax.random.randint(k_e1, (num_edges,), 0, num_nodes),
    ]).astype(jnp.int32)

    # deterministic glorot-ish init, zero biases (biases kept 2D for TPU layout)
    params = {
        "w1": jax.random.normal(k_w1, (in_channels, hidden_channels), jnp.float32)
              * (1.0 / jnp.sqrt(in_channels)),
        "b1": jnp.zeros((1, hidden_channels), jnp.float32),
        "w2": jax.random.normal(k_w2, (hidden_channels, hidden_channels), jnp.float32)
              * (1.0 / jnp.sqrt(hidden_channels)),
        "b2": jnp.zeros((1, hidden_channels), jnp.float32),
    }

    scores = jax.jit(gcn_link_predictor_forward)(params, x, edge_index)
    scores = jax.block_until_ready(scores)

    ref = reference_forward(params, x, edge_index)
    assert scores.shape == (num_edges,)
    # bf16 MXU operands (with f32 accumulation) => compare against the pure
    # f32 reference with a scale-aware tolerance.
    err = float(jnp.max(jnp.abs(scores - ref)))
    scale = float(jnp.max(jnp.abs(ref))) + 1e-6
    assert err <= 5e-2 * scale, f"max-abs error {err:.4e} vs scale {scale:.4e}"

    print("KERNEL_OK")
</pallas_src>

<mosaic_0001>
module attributes {stable_mosaic.version = 11 : i64} {
  func.func private @main(%arg0: i32) attributes {dimension_semantics = [#tpu.dimension_semantics<core_parallel>], iteration_bounds = array<i64: 2>, tpu.core_type = #tpu.core_type<sc_scalar_subcore>, window_params = []} {
    return
  }
}

module attributes {stable_mosaic.version = 11 : i64} {
  func.func private @main(%arg0: i32) attributes {dimension_semantics = [#tpu.dimension_semantics<core_parallel>], iteration_bounds = array<i64: 2>, tpu.core_type = #tpu.core_type<sc_scalar_subcore>, window_params = []} {
    return
  }
}

module attributes {stable_mosaic.version = 11 : i64} {
  func.func @gcn_fused_kernel(%arg0: memref<64x64xbf16, #tpu.memory_space<vmem>>, %arg1: memref<64x16xbf16, #tpu.memory_space<vmem>>, %arg2: memref<16x128xbf16, #tpu.memory_space<vmem>>, %arg3: memref<1x128xf32, #tpu.memory_space<vmem>>, %arg4: memref<128x128xbf16, #tpu.memory_space<vmem>>, %arg5: memref<1x128xf32, #tpu.memory_space<vmem>>, %arg6: memref<128x64xf32, #tpu.memory_space<vmem>>, %arg7: memref<128x64xf32, #tpu.memory_space<vmem>>, %arg8: memref<1x128xf32, #tpu.memory_space<vmem>>) attributes {dimension_semantics = [], scalar_prefetch = 0 : i64, scratch_operands = 0 : i64, tpu.core_type = #tpu.core_type<tc>} {
    %c0 = arith.constant 0 : index
    %c0_0 = arith.constant 0 : index
    %0 = vector.load %arg0[%c0, %c0_0] : memref<64x64xbf16, #tpu.memory_space<vmem>>, vector<64x64xbf16>
    %c0_1 = arith.constant 0 : index
    %c0_2 = arith.constant 0 : index
    %1 = vector.load %arg1[%c0_1, %c0_2] : memref<64x16xbf16, #tpu.memory_space<vmem>>, vector<64x16xbf16>
    %c0_3 = arith.constant 0 : index
    %c0_4 = arith.constant 0 : index
    %2 = vector.load %arg2[%c0_3, %c0_4] : memref<16x128xbf16, #tpu.memory_space<vmem>>, vector<16x128xbf16>
    %cst = arith.constant dense<0.000000e+00> : vector<64x128xf32>
    %3 = tpu.matmul %1, %2, %cst {dimension_numbers = #tpu.dot_dimension_numbers<[1], [0], [0], [1], [0, 0, 1, 1], [], []>} : vector<64x16xbf16>, vector<16x128xbf16>, vector<64x128xf32> -> vector<64x128xf32>
    %4 = arith.truncf %3 : vector<64x128xf32> to vector<64x128xbf16>
    %cst_5 = arith.constant dense<0.000000e+00> : vector<64x128xf32>
    %5 = tpu.matmul %0, %4, %cst_5 {dimension_numbers = #tpu.dot_dimension_numbers<[1], [0], [0], [1], [0, 0, 1, 1], [], []>} : vector<64x64xbf16>, vector<64x128xbf16>, vector<64x128xf32> -> vector<64x128xf32>
    %c0_6 = arith.constant 0 : index
    %c0_7 = arith.constant 0 : index
    %6 = vector.load %arg3[%c0_6, %c0_7] : memref<1x128xf32, #tpu.memory_space<vmem>>, vector<1x128xf32>
    %7 = vector.broadcast %6 : vector<1x128xf32> to vector<64x128xf32>
    %8 = arith.addf %5, %7 : vector<64x128xf32>
    %cst_8 = arith.constant 0.000000e+00 : f32
    %9 = vector.broadcast %cst_8 : f32 to vector<64x128xf32>
    %10 = arith.maximumf %8, %9 : vector<64x128xf32>
    %11 = arith.truncf %10 : vector<64x128xf32> to vector<64x128xbf16>
    %c0_9 = arith.constant 0 : index
    %c0_10 = arith.constant 0 : index
    %12 = vector.load %arg4[%c0_9, %c0_10] : memref<128x128xbf16, #tpu.memory_space<vmem>>, vector<128x128xbf16>
    %cst_11 = arith.constant dense<0.000000e+00> : vector<64x128xf32>
    %13 = tpu.matmul %11, %12, %cst_11 {dimension_numbers = #tpu.dot_dimension_numbers<[1], [0], [0], [1], [0, 0, 1, 1], [], []>} : vector<64x128xbf16>, vector<128x128xbf16>, vector<64x128xf32> -> vector<64x128xf32>
    %14 = arith.truncf %13 : vector<64x128xf32> to vector<64x128xbf16>
    %cst_12 = arith.constant dense<0.000000e+00> : vector<64x128xf32>
    %15 = tpu.matmul %0, %14, %cst_12 {dimension_numbers = #tpu.dot_dimension_numbers<[1], [0], [0], [1], [0, 0, 1, 1], [], []>} : vector<64x64xbf16>, vector<64x128xbf16>, vector<64x128xf32> -> vector<64x128xf32>
    %c0_13 = arith.constant 0 : index
    %c0_14 = arith.constant 0 : index
    %16 = vector.load %arg5[%c0_13, %c0_14] : memref<1x128xf32, #tpu.memory_space<vmem>>, vector<1x128xf32>
    %17 = vector.broadcast %16 : vector<1x128xf32> to vector<64x128xf32>
    %18 = arith.addf %15, %17 : vector<64x128xf32>
    %c0_15 = arith.constant 0 : index
    %c0_16 = arith.constant 0 : index
    %19 = vector.load %arg6[%c0_15, %c0_16] : memref<128x64xf32, #tpu.memory_space<vmem>>, vector<128x64xf32>
    %cst_17 = arith.constant dense<0.000000e+00> : vector<128x128xf32>
    %20 = tpu.matmul %19, %18, %cst_17 {dimension_numbers = #tpu.dot_dimension_numbers<[1], [0], [0], [1], [0, 0, 1, 1], [], []>} : vector<128x64xf32>, vector<64x128xf32>, vector<128x128xf32> -> vector<128x128xf32>
    %c0_18 = arith.constant 0 : index
    %c0_19 = arith.constant 0 : index
    %21 = vector.load %arg7[%c0_18, %c0_19] : memref<128x64xf32, #tpu.memory_space<vmem>>, vector<128x64xf32>
    %cst_20 = arith.constant dense<0.000000e+00> : vector<128x128xf32>
    %22 = tpu.matmul %21, %18, %cst_20 {dimension_numbers = #tpu.dot_dimension_numbers<[1], [0], [0], [1], [0, 0, 1, 1], [], []>} : vector<128x64xf32>, vector<64x128xf32>, vector<128x128xf32> -> vector<128x128xf32>
    %23 = arith.mulf %20, %22 : vector<128x128xf32>
    %cst_21 = arith.constant dense<0.000000e+00> : vector<128xf32>
    %24 = vector.multi_reduction <add>, %23, %cst_21 [1] : vector<128x128xf32> to vector<128xf32>
    %25 = vector.shape_cast %24 : vector<128xf32> to vector<1x128xf32>
    %c0_22 = arith.constant 0 : index
    %c0_23 = arith.constant 0 : index
    %26 = vector.load %arg8[%c0_22, %c0_23] : memref<1x128xf32, #tpu.memory_space<vmem>>, vector<1x128xf32>
    tpu.vector_store %arg8[%c0_22, %c0_23], %25 {strides = array<i32>} : memref<1x128xf32, #tpu.memory_space<vmem>>, vector<1x128xf32>,
    return
  }
}

</mosaic_0001>

<bundles_post_ra>
// kernel: gcn_link_predictor_forward.1
= control target key start
LH: loop header
LB: loop body
LE: loop exit
PB: predicated region body
PF: predicated region fallthrough
CT: control target
= control target key end

     0   :  { %vm75_vm0 = vcmask 130048   ;;  %s1751_s0 = inlined_call_operand.vmem [shape: bf16[64,64], index: 0, kind: input, shape index: {}]   ;;  %s1752_s1 = inlined_call_operand.vmem [shape: bf16[64,16], index: 1, kind: input, shape index: {}]   ;;  %s1753_s2 = inlined_call_operand.vmem [shape: bf16[16,128], index: 2, kind: input, shape index: {}]   ;;  %s1754_s3 = inlined_call_operand.vmem [shape: f32[1,128], index: 3, kind: input, shape index: {}]   ;;  %s1755_s4 = inlined_call_operand.vmem [shape: bf16[128,128], index: 4, kind: input, shape index: {}]   ;;  %s1756_s5 = inlined_call_operand.vmem [shape: f32[1,128], index: 5, kind: input, shape index: {}]   ;;  %s1757_s6 = inlined_call_operand.vmem [shape: f32[128,64], index: 6, kind: input, shape index: {}]   ;;  %s1758_s7 = inlined_call_operand.vmem [shape: f32[128,64], index: 7, kind: input, shape index: {}]   ;;  %s1759_s8 = inlined_call_operand.hbm [shape: f32[1,128], index: 8, kind: output, shape index: {}]  }
   0x1   :  { %v1411_v0 = vld [vmem:[%s1753_s2] sm:$0xff]   ;;  %v1413_v2 = vld [vmem:[%s1752_s1 + $0x8] sm:$0xff]   ;;  %v1414_v3 = vld [vmem:[%s1752_s1 + $0x10] sm:$0xff]  }
   0x2   :  { %v1412_v1 = vld [vmem:[%s1752_s1] sm:$0xff]   ;;  %1232 = vmatprep.subr.bf16.mxu0 %v1411_v0  ;;  %v1415_v4 = vld [vmem:[%s1752_s1 + $0x18] sm:$0xff]  }
   0x3   :  { %1233 = vmatpush3.bf16.msra.mxu0 %v1411_v0  ;;  %1234 = vmatprep.mubr.msk.bf16.mxu0 %vm75_vm0, %v1412_v1 }
   0x6   :  { %1235 = vmatmul.mubr.msk.bf16.vlgmr.msra.gmra.mrb[0].mxu0 %vm75_vm0, %v1413_v2 }
   0x7   :  { %1238 = vmatprep.mubr.msk.bf16.mxu0 %vm75_vm0, %v1414_v3 }
   0x8   :  { %13 = vsyncpa [#allocation3], 0  ;;  %v1416_v5 = vld [vmem:[%s1751_s0] sm:$0xff]   ;;  %vm184_vm1 = vcmask 523264   ;;  %v1421_v7 = vld [vmem:[%s1755_s4 + $0x8] sm:$0xff]   ;;  %vm972_vm2 = vcmask 130112  }
   0x9   :  { %1250 = vmatprep.mubr.msk.bf16.mxu1 %vm184_vm1, %v1416_v5  ;;  %v1420_v6 = vld [vmem:[%s1755_s4] sm:$0xff]   ;;  %v1422_v8 = vld [vmem:[%s1755_s4 + $0x10] sm:$0xff]   ;;  %v1423_v9 = vld [vmem:[%s1755_s4 + $0x18] sm:$0xff]   ;;  %vm979_vm3 = vcmask 195712   ;;  %vm986_vm4 = vcmask 261312   ;;  %vm993_vm5 = vcmask 326912  }
   0xa   :  { %1258 = vmatprep.subr.bf16.mxu0 %v1420_v6  ;;  %v1424_v10 = vld [vmem:[%s1755_s4 + $0x20] sm:$0xff]   ;;  %v1425_v11 = vld [vmem:[%s1755_s4 + $0x28] sm:$0xff]   ;;  %v1543_v25 = vld [vmem:[%s1751_s0 + $0x10] sm:$0xff]   ;;  %vm1000_vm6 = vcmask 392512   ;;  %vm1007_vm7 = vcmask 458112   ;;  %vm1014_vm8 = vcmask 523712  }
   0xb   :  { %1259 = vmatpush3.bf16.msra.mxu0 %v1420_v6  ;;  %v1538_v24 = vld [vmem:[%s1751_s0 + $0x8] sm:$0xff]   ;;  %v1552_v26 = vld [vmem:[%s1751_s0 + $0x18] sm:$0xff]   ;;  %v1426_v27 = vld [vmem:[%s1755_s4 + $0x30] sm:$0xff]   ;;  %vm1021_vm9 = vcmask 589312   ;;  %vm1028_vm10 = vcmask 654912   ;;  %vm1035_vm11 = vcmask 720512  }
   0xc   :  { %1260 = vmatprep.subr.bf16.mxu0 %v1421_v7  ;;  %v1427_v28 = vld [vmem:[%s1755_s4 + $0x38] sm:$0xff]   ;;  %v1097_v29 = vld [vmem:[%s1754_s3] ss:$0 sm:$0xff]  ;;  %vm1042_vm12 = vcmask 786112   ;;  %vm1049_vm13 = vcmask 851712   ;;  %vm1056_vm14 = vcmask 917312  }
   0xd   :  { %v479_v6 = vld [vmem:[%s1757_s6] sm:$0xff]  ;;  %vm1063_vm15 = vcmask 982912  }
   0xe   :  { %1239 = vmatmul.mubr.msk.bf16.gmra.mrb[4].mxu0 %vm75_vm0, %v1415_v4  ;;  %vm1070_vm0 = vcmask 1048512  }
   0xf   :  { %1261 = vmatpush3.bf16.msra.mxu0 %v1421_v7  ;;  %v688_v7 = vld [vmem:[%s1758_s7] sm:$0xff] }
  0x10   :  { %1262 = vmatprep.subr.bf16.mxu0 %v1422_v8 }
  0x13   :  { %1263 = vmatpush3.bf16.msra.mxu0 %v1422_v8 }
  0x14   :  { %1264 = vmatprep.subr.bf16.mxu0 %v1423_v9 }
  0x17   :  { %1265 = vmatpush3.bf16.msra.mxu0 %v1423_v9  ;;  %v1114_v9 = vld [vmem:[%s1756_s5] ss:$0 sm:$0xff] }
  0x18   :  { %1266 = vmatprep.subr.bf16.mxu0 %v1424_v10 }
  0x1b   :  { %1267 = vmatpush3.bf16.msra.mxu0 %v1424_v10 }
  0x1c   :  { %1268 = vmatprep.subr.bf16.mxu0 %v1425_v11 }
  0x1f   :  { %1269 = vmatpush3.bf16.msra.mxu0 %v1425_v11 }
  0x20   :  { %1270 = vmatprep.subr.bf16.mxu0 %v1426_v27 }
  0x23   :  { %1271 = vmatpush3.bf16.msra.mxu0 %v1426_v27 }
  0x24   :  { %1272 = vmatprep.subr.bf16.mxu0 %v1427_v28 }
  0x27   :  { %1273 = vmatpush3.bf16.msra.mxu0 %v1427_v28 }
  0xd9   :  { %v1236_v12 = vpop.f32.mrb[0].mxu0 }
  0xda   :  { %v122_v13 = vpop.f32.mrb[1].mxu0 }
  0xdb   :  { %v1237_v14 = vpop.f32.mrb[2].mxu0 }
  0xdc   :  { %v154_v15 = vpack.c.bf16 %v1237_v14, %v1236_v12  ;;  %v125_v16 = vpop.f32.mrb[3].mxu0 }
  0xdd   :  { %v153_v17 = vpack.c.bf16 %v125_v16, %v122_v13 }
  0xdf   :  { %1242 = vmatprep.subr.bf16.mxu1 %v153_v17 }
  0xe0   :  { %1243 = vmatpush3.bf16.msra.mxu1 %v153_v17 }
  0xe1   :  { %v1240_v18 = vpop.f32.mrb[4].mxu0  ;;  %1244 = vmatprep.subr.bf16.mxu1 %v154_v15 }
  0xe2   :  { %v138_v19 = vpop.f32.mrb[5].mxu0 }
  0xe3   :  { %v1241_v20 = vpop.f32.mrb[6].mxu0 }
  0xe4   :  { %v156_v21 = vpack.c.bf16 %v1241_v20, %v1240_v18  ;;  %v141_v22 = vpop.f32.mrb[7].mxu0  ;;  %1245 = vmatpush3.bf16.msra.mxu1 %v154_v15 }
  0xe5   :  { %v155_v23 = vpack.c.bf16 %v141_v22, %v138_v19 }
  0xe7   :  { %1246 = vmatprep.subr.bf16.mxu1 %v155_v23 }
  0xe8   :  { %1247 = vmatpush3.bf16.msra.mxu1 %v155_v23 }
  0xe9   :  { %1248 = vmatprep.subr.bf16.mxu1 %v156_v21 }
  0xec   :  { %1249 = vmatpush3.bf16.msra.mxu1 %v156_v21 }
  0xef   :  { %1251 = vmatmul.mubr.msk.bf16.vlgmr.msra.gmra.mrb[0].mxu1 %vm184_vm1, %v1538_v24 }
  0xf0   :  { %1254 = vmatprep.mubr.msk.bf16.mxu1 %vm184_vm1, %v1543_v25 }
  0xf7   :  { %1255 = vmatmul.mubr.msk.bf16.gmra.mrb[4].mxu1 %vm184_vm1, %v1552_v26 }
  0xf8   :  { %1290 = vmatprep.mubr.msk.bf16.mxu1 %vm184_vm1, %v1416_v5 }
 0x1c2   :  { %v1252_v30 = vpop.f32.mrb[0].mxu1 }
 0x1c3   :  { %v240_v31 = vadd.f32 %v1252_v30, %v1097_v29  ;;  %v231_v32 = vpop.f32.mrb[1].mxu1  ;;  %v689_v30 = vld [vmem:[%s1758_s7 + $0x8] sm:$0xff] }
 0x1c4   :  { %v232_v33 = vadd.f32 %v1097_v29, %v231_v32  ;;  %v1253_v34 = vpop.f32.mrb[2].mxu1  ;;  %v690_v32 = vld [vmem:[%s1758_s7 + $0x10] sm:$0xff] }
 0x1c5   :  { %v243_v35 = vadd.f32 %v1253_v34, %v1097_v29  ;;  %v234_v36 = vpop.f32.mrb[3].mxu1  ;;  %v264_v38 = vmax.f32 %v240_v31, 0.0  ;;  %v481_v31 = vld [vmem:[%s1757_s6 + $0x10] sm:$0xff]  ;;  %v691_v34 = vld [vmem:[%s1758_s7 + $0x18] sm:$0xff] }
 0x1c6   :  { %v235_v37 = vadd.f32 %v1097_v29, %v234_v36  ;;  %v262_v40 = vmax.f32 %v232_v33, 0.0  ;;  %v482_v33 = vld [vmem:[%s1757_s6 + $0x18] sm:$0xff]  ;;  %v692_v36 = vld [vmem:[%s1758_s7 + $0x20] sm:$0xff] }
 0x1c7   :  { %v265_v39 = vmax.f32 %v243_v35, 0.0  ;;  %v483_v35 = vld [vmem:[%s1757_s6 + $0x20] sm:$0xff] }
 0x1c8   :  { %v263_v41 = vmax.f32 %v235_v37, 0.0  ;;  %v484_v37 = vld [vmem:[%s1757_s6 + $0x28] sm:$0xff] }
 0x1c9   :  { %v271_v42 = vpack.c.bf16 %v265_v39, %v264_v38  ;;  %v693_v38 = vld [vmem:[%s1758_s7 + $0x28] sm:$0xff]  ;;  %v485_v39 = vld [vmem:[%s1757_s6 + $0x30] sm:$0xff] }
 0x1ca   :  { %v270_v43 = vpack.c.bf16 %v263_v41, %v262_v40  ;;  %v1256_v44 = vpop.f32.mrb[4].mxu1  ;;  %v694_v40 = vld [vmem:[%s1758_s7 + $0x30] sm:$0xff]  ;;  %v486_v41 = vld [vmem:[%s1757_s6 + $0x38] sm:$0xff] }
 0x1cb   :  { %v256_v45 = vadd.f32 %v1256_v44, %v1097_v29  ;;  %v247_v46 = vpop.f32.mrb[5].mxu1  ;;  %v696_v44 = vld [vmem:[%s1758_s7 + $0x40] sm:$0xff] }
 0x1cc   :  { %v248_v47 = vadd.f32 %v1097_v29, %v247_v46  ;;  %v1257_v48 = vpop.f32.mrb[6].mxu1  ;;  %1274 = vmatprep.mubr.bf16.mxu0 %v270_v43  ;;  %v487_v43 = vld [vmem:[%s1757_s6 + $0x40] sm:$0xff]  ;;  %v697_v46 = vld [vmem:[%s1758_s7 + $0x48] sm:$0xff] }
 0x1cd   :  { %v259_v49 = vadd.f32 %v1257_v48, %v1097_v29  ;;  %v250_v50 = vpop.f32.mrb[7].mxu1  ;;  %1275 = vmatmul.mubr.bf16.vlgmr.msra.gmra.mrb[8].mxu0 %v271_v42  ;;  %v268_v52 = vmax.f32 %v256_v45, 0.0  ;;  %v695_v42 = vld [vmem:[%s1758_s7 + $0x38] sm:$0xff]  ;;  %v488_v45 = vld [vmem:[%s1757_s6 + $0x48] sm:$0xff]  ;;  %v698_v48 = vld [vmem:[%s1758_s7 + $0x50] sm:$0xff] }
 0x1ce   :  { %v251_v51 = vadd.f32 %v1097_v29, %v250_v50  ;;  %v266_v54 = vmax.f32 %v248_v47, 0.0  ;;  %v480_v29 = vld [vmem:[%s1757_s6 + $0x8] sm:$0xff]  ;;  %v489_v47 = vld [vmem:[%s1757_s6 + $0x50] sm:$0xff]  ;;  %v699_v50 = vld [vmem:[%s1758_s7 + $0x58] sm:$0xff] }
 0x1cf   :  { %v269_v53 = vmax.f32 %v259_v49, 0.0  ;;  %v490_v49 = vld [vmem:[%s1757_s6 + $0x58] sm:$0xff] }
 0x1d0   :  { %v267_v55 = vmax.f32 %v251_v51, 0.0  ;;  %v491_v51 = vld [vmem:[%s1757_s6 + $0x60] sm:$0xff] }
 0x1d1   :  { %v273_v56 = vpack.c.bf16 %v269_v53, %v268_v52  ;;  %v700_v52 = vld [vmem:[%s1758_s7 + $0x60] sm:$0xff]  ;;  %v492_v53 = vld [vmem:[%s1757_s6 + $0x68] sm:$0xff] }
 0x1d2   :  { %v272_v57 = vpack.c.bf16 %v267_v55, %v266_v54  ;;  %v701_v54 = vld [vmem:[%s1758_s7 + $0x68] sm:$0xff]  ;;  %v493_v55 = vld [vmem:[%s1757_s6 + $0x70] sm:$0xff] }
 0x1d4   :  { %1278 = vmatprep.mubr.bf16.mxu0 %v272_v57  ;;  %v494_v57 = vld [vmem:[%s1757_s6 + $0x78] sm:$0xff]  ;;  %s1452_s6 = smov [#allocation2]  }
 0x1d5   :  { %1279 = vmatmul.mubr.bf16.gmra.mrb[12].mxu0 %v273_v56  ;;  %v702_v56 = vld [vmem:[%s1758_s7 + $0x70] sm:$0xff] }
 0x1d6   :  { %1354 = vmatprep.mubr.msk.f32.mxu0 %vm184_vm1, %v688_v7 }
 0x2a0   :  { %v1276_v58 = vpop.f32.mrb[8].mxu0 }
 0x2a1   :  { %v372_v59 = vpop.f32.mrb[9].mxu0 }
 0x2a2   :  { %v1277_v60 = vpop.f32.mrb[10].mxu0 }
 0x2a3   :  { %v404_v61 = vpack.c.bf16 %v1277_v60, %v1276_v58  ;;  %v375_v62 = vpop.f32.mrb[11].mxu0  ;;  %v703_v58 = vld [vmem:[%s1758_s7 + $0x78] sm:$0xff]  ;;  %s1080_s7 = sshll.u32 %s1452_s6, 4  ;;  %s1081_s7 = int_to_ptr.vmem [resolvable:$true] %s1080_s7 }
 0x2a4   :  { %v403_v63 = vpack.c.bf16 %v375_v62, %v372_v59  ;;  %s1428_s21 = scalar_lea.vmem %s1081_s7, 16  ;;  %s1432_s22 = scalar_lea.vmem %s1081_s7, 32 }
 0x2a5   :  { %p1429_p0 = scmp.ne.s32.totalorder %s1081_s7, %s1428_s21  ;;  %p1433_p1 = scmp.lt.s32.totalorder %s1081_s7, %s1081_s7 }
 0x2a6   :  { %1282 = vmatprep.subr.bf16.mxu1 %v403_v63  ;;  %p1434_p2 = scmp.lt.s32.totalorder %s1432_s22, %s1428_s21 }
 0x2a7   :  { %1283 = vmatpush3.bf16.msra.mxu1 %v403_v63 }
 0x2a8   :  { %v1280_v0 = vpop.f32.mrb[12].mxu0  ;;  %1284 = vmatprep.subr.bf16.mxu1 %v404_v61  ;;  %p1435_p3 = por %p1434_p2, %p1433_p1 }
 0x2a9   :  { %v388_v1 = vpop.f32.mrb[13].mxu0 }
 0x2aa   :  { %v1281_v2 = vpop.f32.mrb[14].mxu0  ;;  %p1436_p4 = pnand %p1435_p3, %p1429_p0 }
 0x2ab   :  { %v406_v3 = vpack.c.bf16 %v1281_v2, %v1280_v0  ;;  %v391_v4 = vpop.f32.mrb[15].mxu0  ;;  %1285 = vmatpush3.bf16.msra.mxu1 %v404_v61 }
 0x2ac   :  { %v405_v5 = vpack.c.bf16 %v391_v4, %v388_v1 }
 0x2ae   :  { %1286 = vmatprep.subr.bf16.mxu1 %v405_v5 }
 0x2af   :  { %1287 = vmatpush3.bf16.msra.mxu1 %v405_v5 }
 0x2b0   :  { %1288 = vmatprep.subr.bf16.mxu1 %v406_v3 }
 0x2b3   :  { %1289 = vmatpush3.bf16.msra.mxu1 %v406_v3 }
 0x2b6   :  { %1291 = vmatmul.mubr.msk.bf16.vlgmr.msra.gmra.mrb[8].mxu1 %vm184_vm1, %v1538_v24 }
 0x2b7   :  { %1294 = vmatprep.mubr.msk.bf16.mxu1 %vm184_vm1, %v1543_v25 }
 0x2be   :  { %1295 = vmatmul.mubr.msk.bf16.gmra.mrb[12].mxu1 %vm184_vm1, %v1552_v26 }
 0x2bf   :  { %1314 = vmatprep.mubr.msk.f32.mxu1 %vm184_vm1, %v479_v6 }
 0x389   :  { %v1292_v8 = vpop.f32.mrb[8].mxu1 }
 0x38a   :  { %v448_v10 = vpop.f32.mrb[9].mxu1  ;;  %v457_v12 = vadd.f32 %v1292_v8, %v1114_v9 }
 0x38b   :  { %v1293_v11 = vpop.f32.mrb[10].mxu1  ;;  %v449_v15 = vadd.f32 %v1114_v9, %v448_v10 }
 0x38c   :  { %v460_v13 = vadd.f32 %v1293_v11, %v1114_v9  ;;  %v451_v14 = vpop.f32.mrb[11].mxu1 }
 0x38d   :  { %v452_v16 = vadd.f32 %v1114_v9, %v451_v14 }
 0x38e   :  { %v1382_v17 = vpack.c.bf16 %v460_v13, %v457_v12 }
 0x38f   :  { %v1378_v18 = vpack.c.bf16 %v452_v16, %v449_v15 }
 0x391   :  { %v1296_v19 = vpop.f32.mrb[12].mxu1  ;;  %1379 = vmatprep.subr.bf16.mxu1 %v1378_v18  ;;  %1395 = vmatprep.subr.bf16.mxu0 %v1378_v18 }
 0x392   :  { %v464_v20 = vpop.f32.mrb[13].mxu1  ;;  %1381 = vmatpush3.bf16.msra.mxu1 %v1378_v18  ;;  %1397 = vmatpush3.bf16.msra.mxu0 %v1378_v18  ;;  %v473_v22 = vadd.f32 %v1296_v19, %v1114_v9 }
 0x393   :  { %v1297_v21 = vpop.f32.mrb[14].mxu1  ;;  %1383 = vmatprep.subr.bf16.mxu1 %v1382_v17  ;;  %1399 = vmatprep.subr.bf16.mxu0 %v1382_v17  ;;  %v465_v25 = vadd.f32 %v1114_v9, %v464_v20 }
 0x394   :  { %v476_v23 = vadd.f32 %v1297_v21, %v1114_v9  ;;  %v467_v24 = vpop.f32.mrb[15].mxu1 }
 0x395   :  { %v468_v26 = vadd.f32 %v1114_v9, %v467_v24 }
 0x396   :  { %v1390_v27 = vpack.c.bf16 %v476_v23, %v473_v22  ;;  %1385 = vmatpush3.bf16.msra.mxu1 %v1382_v17  ;;  %1401 = vmatpush3.bf16.msra.mxu0 %v1382_v17 }
 0x397   :  { %v1386_v28 = vpack.c.bf16 %v468_v26, %v465_v25 }
 0x399   :  { %1387 = vmatprep.subr.bf16.mxu1 %v1386_v28  ;;  %1403 = vmatprep.subr.bf16.mxu0 %v1386_v28 }
 0x39a   :  { %1389 = vmatpush3.bf16.msra.mxu1 %v1386_v28  ;;  %1405 = vmatpush3.bf16.msra.mxu0 %v1386_v28 }
 0x39b   :  { %1391 = vmatprep.subr.bf16.mxu1 %v1390_v27  ;;  %1407 = vmatprep.subr.bf16.mxu0 %v1390_v27 }
 0x39e   :  { %1393 = vmatpush3.bf16.msra.mxu1 %v1390_v27  ;;  %1409 = vmatpush3.bf16.msra.mxu0 %v1390_v27 }
 0x3a1   :  { %1315 = vmatmul.mubr.msk.f32.vlgmr.msra.gmra.mrb[16].mxu1 %vm184_vm1, %v480_v29  ;;  %1355 = vmatmul.mubr.msk.f32.vlgmr.msra.gmra.mrb[16].mxu0 %vm184_vm1, %v689_v30 }
 0x3a2   :  { %1317 = vmatprep.mubr.msk.f32.mxu1 %vm184_vm1, %v481_v31  ;;  %1357 = vmatprep.mubr.msk.f32.mxu0 %vm184_vm1, %v690_v32 }
 0x3a5   :  { %1318 = vmatmul.mubr.msk.f32.gmra.mrb[18].mxu1 %vm184_vm1, %v482_v33  ;;  %1358 = vmatmul.mubr.msk.f32.gmra.mrb[18].mxu0 %vm184_vm1, %v691_v34 }
 0x3a6   :  { %1320 = vmatprep.mubr.msk.f32.mxu1 %vm184_vm1, %v483_v35  ;;  %1360 = vmatprep.mubr.msk.f32.mxu0 %vm184_vm1, %v692_v36 }
 0x3a9   :  { %1321 = vmatmul.mubr.msk.f32.gmra.mrb[20].mxu1 %vm184_vm1, %v484_v37  ;;  %1361 = vmatmul.mubr.msk.f32.gmra.mrb[20].mxu0 %vm184_vm1, %v693_v38 }
 0x3aa   :  { %1323 = vmatprep.mubr.msk.f32.mxu1 %vm184_vm1, %v485_v39  ;;  %1363 = vmatprep.mubr.msk.f32.mxu0 %vm184_vm1, %v694_v40 }
 0x3ad   :  { %1324 = vmatmul.mubr.msk.f32.gmra.mrb[22].mxu1 %vm184_vm1, %v486_v41  ;;  %1364 = vmatmul.mubr.msk.f32.gmra.mrb[22].mxu0 %vm184_vm1, %v695_v42 }
 0x3ae   :  { %1326 = vmatprep.mubr.msk.f32.mxu1 %vm184_vm1, %v487_v43  ;;  %1366 = vmatprep.mubr.msk.f32.mxu0 %vm184_vm1, %v696_v44  ;;  %v961_v43 = vlaneseq }
 0x3b0   :  { %v1703_v44 = vand.u32 127, %v961_v43 }
 0x3b1   :  { %1327 = vmatmul.mubr.msk.f32.gmra.mrb[24].mxu1 %vm184_vm1, %v488_v45  ;;  %1367 = vmatmul.mubr.msk.f32.gmra.mrb[24].mxu0 %vm184_vm1, %v697_v46  ;;  %v1705_v45 = vshrl.u32 %v961_v43, 7 }
 0x3b2   :  { %1329 = vmatprep.mubr.msk.f32.mxu1 %vm184_vm1, %v489_v47  ;;  %1369 = vmatprep.mubr.msk.f32.mxu0 %vm184_vm1, %v698_v48  ;;  %v967_v46 = vadd.s32 4294967288, %v1703_v44  ;;  %v974_v48 = vadd.s32 4294967280, %v1703_v44 }
 0x3b5   :  { %1330 = vmatmul.mubr.msk.f32.gmra.mrb[26].mxu1 %vm184_vm1, %v490_v49  ;;  %1370 = vmatmul.mubr.msk.f32.gmra.mrb[26].mxu0 %vm184_vm1, %v699_v50  ;;  %v965_v49 = vsub.s32 %v1703_v44, %v1705_v45  ;;  %v981_v50 = vadd.s32 4294967272, %v1703_v44 }
 0x3b6   :  { %1332 = vmatprep.mubr.msk.f32.mxu1 %vm184_vm1, %v491_v51  ;;  %1372 = vmatprep.mubr.msk.f32.mxu0 %vm184_vm1, %v700_v52  ;;  %v988_v51 = vadd.s32 4294967264, %v1703_v44  ;;  %v970_v52 = vsub.s32 %v967_v46, %v1705_v45  ;;  %v1065_v46 = vadd.s32 4294967176, %v1703_v44 }
 0x3b9   :  { %1333 = vmatmul.mubr.msk.f32.gmra.mrb[28].mxu1 %vm184_vm1, %v492_v53  ;;  %1373 = vmatmul.mubr.msk.f32.gmra.mrb[28].mxu0 %vm184_vm1, %v701_v54 }
 0x3ba   :  { %1335 = vmatprep.mubr.msk.f32.mxu1 %vm184_vm1, %v493_v55  ;;  %1375 = vmatprep.mubr.msk.f32.mxu0 %vm184_vm1, %v702_v56  ;;  %v995_v55 = vadd.s32 4294967256, %v1703_v44  ;;  %v977_v56 = vsub.s32 %v974_v48, %v1705_v45 }
 0x3bd   :  { %1336 = vmatmul.mubr.msk.f32.gmra.mrb[30].mxu1 %vm184_vm1, %v494_v57  ;;  %1376 = vmatmul.mubr.msk.f32.gmra.mrb[30].mxu0 %vm184_vm1, %v703_v58  ;;  %v1002_v57 = vadd.s32 4294967248, %v1703_v44 }
 0x474   :  { %v1316_v59 = vpop.f32.mrb[16].mxu1  ;;  %v1356_v60 = vpop.f32.mrb[16].mxu0 }
 0x475   :  { %v609_v61 = vpop.f32.mrb[17].mxu1  ;;  %v818_v62 = vpop.f32.mrb[17].mxu0  ;;  %v898_v63 = vmul.f32 %v1356_v60, %v1316_v59  ;;  %v984_v59 = vsub.s32 %v981_v50, %v1705_v45  ;;  %v991_v60 = vsub.s32 %v988_v51, %v1705_v45 }
 0x476   :  { %v897_v0 = vmul.f32 %v818_v62, %v609_v61 }
 0x477   :  { %915 = vadd.xlane.f32.xlu0 %v898_v63  ;;  %v998_v63 = vsub.s32 %v995_v55, %v1705_v45 }
 0x478   :  { %v1319_v1 = vpop.f32.mrb[18].mxu1  ;;  %v1359_v2 = vpop.f32.mrb[18].mxu0 }
 0x479   :  { %v619_v3 = vpop.f32.mrb[19].mxu1  ;;  %v828_v4 = vpop.f32.mrb[19].mxu0  ;;  %v900_v5 = vmul.f32 %v1359_v2, %v1319_v1  ;;  %v1005_v2 = vsub.s32 %v1002_v57, %v1705_v45 }
 0x47a   :  { %v899_v6 = vmul.f32 %v828_v4, %v619_v3  ;;  %v1009_v3 = vadd.s32 4294967240, %v1703_v44 }
 0x47b   :  { %913 = vadd.xlane.f32.xlu0 %v897_v0  ;;  %919 = vadd.xlane.f32.xlu1 %v900_v5 }
 0x47c   :  { %v1322_v7 = vpop.f32.mrb[20].mxu1  ;;  %v1362_v8 = vpop.f32.mrb[20].mxu0 }
 0x47d   :  { %v902_v9 = vmul.f32 %v1362_v8, %v1322_v7  ;;  %v629_v10 = vpop.f32.mrb[21].mxu1  ;;  %v838_v11 = vpop.f32.mrb[21].mxu0  ;;  %v1016_v7 = vadd.s32 4294967232, %v1703_v44 }
 0x47e   :  { %v901_v12 = vmul.f32 %v838_v11, %v629_v10 }
 0x47f   :  { %917 = vadd.xlane.f32.xlu1 %v899_v6 }
 0x480   :  { %v1365_v13 = vpop.f32.mrb[22].mxu0  ;;  %921 = vadd.xlane.f32.xlu0 %v901_v12  ;;  %v1325_v14 = vpop.f32.mrb[22].mxu1 }
 0x481   :  { %v904_v15 = vmul.f32 %v1365_v13, %v1325_v14  ;;  %v639_v16 = vpop.f32.mrb[23].mxu1  ;;  %v848_v17 = vpop.f32.mrb[23].mxu0  ;;  %v1012_v14 = vsub.s32 %v1009_v3, %v1705_v45 }
 0x482   :  { %v903_v18 = vmul.f32 %v848_v17, %v639_v16  ;;  %v1019_v17 = vsub.s32 %v1016_v7, %v1705_v45 }
 0x483   :  { %923 = vadd.xlane.f32.xlu1 %v902_v9 }
 0x484   :  { %v1368_v19 = vpop.f32.mrb[24].mxu0  ;;  %925 = vadd.xlane.f32.xlu0 %v903_v18  ;;  %v1328_v20 = vpop.f32.mrb[24].mxu1  ;;  %v1030_v18 = vadd.s32 4294967216, %v1703_v44 }
 0x485   :  { %v906_v21 = vmul.f32 %v1368_v19, %v1328_v20  ;;  %v649_v22 = vpop.f32.mrb[25].mxu1  ;;  %v858_v23 = vpop.f32.mrb[25].mxu0 }
 0x486   :  { %v905_v24 = vmul.f32 %v858_v23, %v649_v22 }
 0x487   :  { %927 = vadd.xlane.f32.xlu1 %v904_v15  ;;  %v1023_v15 = vadd.s32 4294967224, %v1703_v44 }
 0x488   :  { %v1371_v25 = vpop.f32.mrb[26].mxu0  ;;  %929 = vadd.xlane.f32.xlu0 %v905_v24  ;;  %v1331_v26 = vpop.f32.mrb[26].mxu1  ;;  %v1037_v24 = vadd.s32 4294967208, %v1703_v44 }
 0x489   :  { %v908_v27 = vmul.f32 %v1371_v25, %v1331_v26  ;;  %v659_v28 = vpop.f32.mrb[27].mxu1  ;;  %v868_v29 = vpop.f32.mrb[27].mxu0  ;;  %v1026_v23 = vsub.s32 %v1023_v15, %v1705_v45 }
 0x48a   :  { %v907_v30 = vmul.f32 %v868_v29, %v659_v28  ;;  %v1044_v28 = vadd.s32 4294967200, %v1703_v44 }
 0x48b   :  { %931 = vadd.xlane.f32.xlu1 %v906_v21 }
 0x48c   :  { %v1374_v31 = vpop.f32.mrb[28].mxu0  ;;  %933 = vadd.xlane.f32.xlu0 %v907_v30  ;;  %v1334_v32 = vpop.f32.mrb[28].mxu1 }
 0x48d   :  { %v910_v33 = vmul.f32 %v1374_v31, %v1334_v32  ;;  %v669_v34 = vpop.f32.mrb[29].mxu1  ;;  %v878_v35 = vpop.f32.mrb[29].mxu0 }
 0x48e   :  { %v909_v36 = vmul.f32 %v878_v35, %v669_v34  ;;  %v1051_v34 = vadd.s32 4294967192, %v1703_v44 }
 0x48f   :  { %935 = vadd.xlane.f32.xlu1 %v908_v27  ;;  %v1033_v27 = vsub.s32 %v1030_v18, %v1705_v45 }
 0x490   :  { %v1377_v37 = vpop.f32.mrb[30].mxu0  ;;  %937 = vadd.xlane.f32.xlu0 %v909_v36  ;;  %v1337_v38 = vpop.f32.mrb[30].mxu1  ;;  %v1054_v43 = vsub.s32 %v1051_v34, %v1705_v45 }
 0x491   :  { %v912_v39 = vmul.f32 %v1377_v37, %v1337_v38  ;;  %v679_v40 = vpop.f32.mrb[31].mxu1  ;;  %v888_v41 = vpop.f32.mrb[31].mxu0  ;;  %v1047_v37 = vsub.s32 %v1044_v28, %v1705_v45  ;;  %v1058_v38 = vadd.s32 4294967184, %v1703_v44 }
 0x492   :  { %v911_v42 = vmul.f32 %v888_v41, %v679_v40 }
 0x493   :  { %939 = vadd.xlane.f32.xlu1 %v910_v33  ;;  %v1040_v33 = vsub.s32 %v1037_v24, %v1705_v45 }
 0x494   :  { %941 = vadd.xlane.f32.xlu0 %v911_v42 }
 0x497   :  { %943 = vadd.xlane.f32.xlu1 %v912_v39 }
 0x504   :  { %v916_v47 = vpop.xlane.xlu0 %915 }
 0x505   :  { %v971_v61 = vrot.slane %v916_v47, %v970_v52 }
 0x508   :  { %v914_v53 = vpop.xlane.xlu0 %913  ;;  %v920_v54 = vpop.xlane.xlu1 %919 }
 0x509   :  { %v966_v58 = vrot.slane %v914_v53, %v965_v49  ;;  %v985_v5 = vrot.slane %v920_v54, %v984_v59  ;;  %v1061_v49 = vsub.s32 %v1058_v38, %v1705_v45  ;;  %v1068_v54 = vsub.s32 %v1065_v46, %v1705_v45 }
 0x50b   :  { %v973_v4 = vsel %vm972_vm2, %v971_v61, %v966_v58 }
 0x50c   :  { %v918_v62 = vpop.xlane.xlu1 %917 }
 0x50d   :  { %v978_v0 = vrot.slane %v918_v62, %v977_v56  ;;  %v922_v1 = vpop.xlane.xlu0 %921 }
 0x50e   :  { %v992_v6 = vrot.slane %v922_v1, %v991_v60 }
 0x50f   :  { %v980_v8 = vsel %vm979_vm3, %v978_v0, %v973_v4 }
 0x510   :  { %v987_v9 = vsel %vm986_vm4, %v985_v5, %v980_v8  ;;  %v924_v10 = vpop.xlane.xlu1 %923 }
 0x511   :  { %v994_v11 = vsel %vm993_vm5, %v992_v6, %v987_v9  ;;  %v999_v12 = vrot.slane %v924_v10, %v998_v63  ;;  %v926_v13 = vpop.xlane.xlu0 %925 }
 0x512   :  { %v1006_v16 = vrot.slane %v926_v13, %v1005_v2 }
 0x513   :  { %v1001_v19 = vsel %vm1000_vm6, %v999_v12, %v994_v11 }
 0x514   :  { %v928_v20 = vpop.xlane.xlu1 %927  ;;  %v1008_v25 = vsel %vm1007_vm7, %v1006_v16, %v1001_v19 }
 0x515   :  { %v1013_v21 = vrot.slane %v928_v20, %v1012_v14  ;;  %v930_v22 = vpop.xlane.xlu0 %929 }
 0x516   :  { %v1020_v26 = vrot.slane %v930_v22, %v1019_v17 }
 0x517   :  { %v1015_v29 = vsel %vm1014_vm8, %v1013_v21, %v1008_v25 }
 0x518   :  { %v932_v30 = vpop.xlane.xlu1 %931  ;;  %v1022_v35 = vsel %vm1021_vm9, %v1020_v26, %v1015_v29 }
 0x519   :  { %v1027_v31 = vrot.slane %v932_v30, %v1026_v23  ;;  %v934_v32 = vpop.xlane.xlu0 %933 }
 0x51a   :  { %v1034_v36 = vrot.slane %v934_v32, %v1033_v27 }
 0x51b   :  { %v1029_v39 = vsel %vm1028_vm10, %v1027_v31, %v1022_v35 }
 0x51c   :  { %v936_v40 = vpop.xlane.xlu1 %935  ;;  %v1036_v47 = vsel %vm1035_vm11, %v1034_v36, %v1029_v39 }
 0x51d   :  { %v1041_v41 = vrot.slane %v936_v40, %v1040_v33  ;;  %v938_v42 = vpop.xlane.xlu0 %937 }
 0x51e   :  { %v1048_v48 = vrot.slane %v938_v42, %v1047_v37 }
 0x51f   :  { %v1043_v50 = vsel %vm1042_vm12, %v1041_v41, %v1036_v47 }
 0x520   :  { %v940_v51 = vpop.xlane.xlu1 %939  ;;  %v1050_v55 = vsel %vm1049_vm13, %v1048_v48, %v1043_v50 }
 0x521   :  { %v1055_v52 = vrot.slane %v940_v51, %v1054_v43  ;;  %v942_v53 = vpop.xlane.xlu0 %941 }
 0x522   :  { %v1062_v56 = vrot.slane %v942_v53, %v1061_v49 }
 0x523   :  { %v1057_v57 = vsel %vm1056_vm14, %v1055_v52, %v1050_v55 }
 0x524   :  { %v944_v58 = vpop.xlane.xlu1 %943  ;;  %v1064_v59 = vsel %vm1063_vm15, %v1062_v56, %v1057_v57 }
 0x525   :  { %v1069_v44 = vrot.slane %v944_v58, %v1068_v54 }
 0x527   :  { %v1071_v60 = vsel %vm1070_vm0, %v1069_v44, %v1064_v59 }
 0x528   :  { %1073 = vst [vmem:[#allocation2] sm:$0x1] %v1071_v60 }
 0x529   :  { %1439 = shalt.err (!%p1436_p4)
}
 0x52a   :  { %s1440_s25 = scalar_lea.hbm %s1759_s8, 16 }
 0x52b   :  { %p1441_p5 = scmp.ne.s32.totalorder %s1759_s8, %s1440_s25  ;;  %p1444_p6 = scmp.lt.u32.totalorder %s1440_s25, %s1759_s8 }
 0x52d   :  { %p1446_p7 = pnand %p1444_p6, %p1441_p5 }
 0x52f   :  { %1449 = shalt.err (!%p1446_p7)
}
 0x530   :  { %1083 = dma.vmem_to_hbm [thread:$0]  %s1081_s7, 16, %s1759_s8, [#allocation3]  }
 0x531   :  { %1450 = dma.done.wait [#allocation3], 16  }
 0x532   :  { %1451 = vsyncadd [#allocation3], 4294967280 }
 0x533   :  { %1087 = vsyncpa [#allocation3], 1 }

</bundles_post_ra>
